<compile_context>
chip_gen: v7x
topology: tpu7x:2x2x1
jax: 0.10.0
libtpu: 0.0.40
codegen_flags: <defaults>
</compile_context>

<pallas_src>
import math

import jax
import jax.numpy as jnp
from jax.experimental import pallas as pl
from jax.experimental.pallas import tpu as pltpu

# ---------------- model hyper-parameters (small, consistent with the module) ----
B = 2          # batch
S = 8          # seq_len
C_IN = 4       # channel_in
D = 32         # d_model
D_FF = 64      # d_ff (stored by TemporalLayer but unused in its forward path)
H = 4          # num_heads
DK = D // H    # d_k
BS = B * S     # batch folded into rows
R = H * BS     # packed-head rows, ordered (head, batch, seq)
HC = H * C_IN  # block-diagonal input width
EPS = 1e-6
SQRT_D = math.sqrt(D)
SQRT_DK = math.sqrt(DK)
NEG_INF = -1e30

# ---------------- layout of the single constant slab (NROWS x 64 lanes, f32) ----
CW = 64
ROW_AMASK = 0                      # (R, R)     additive block-diag attention mask
ROW_ST    = ROW_AMASK + R          # (BS, R)    head-sum / unpack matrix  S^T
ROW_S     = ROW_ST + BS            # (R, BS)    row replication one-hot   S
ROW_MBD   = ROW_S + R              # (R, HC)    block-diag 0/1 mask for x expansion
ROW_BQ    = ROW_MBD + R            # (R, DK)    head-packed Q bias (emb/pe folded)
ROW_BK    = ROW_BQ + R             # (R, DK)    head-packed K bias
ROW_BV1   = ROW_BK + R             # (R, D)     (block V bias) @ ff_w1
ROW_WV1   = ROW_BV1 + R            # (HC, D)    (block-diag V weight) @ ff_w1
ROW_WQ    = ROW_WV1 + HC           # (HC, DK)   head-packed Q weight (1/sqrt(dk) folded)
ROW_WK    = ROW_WQ + HC            # (HC, DK)   head-packed K weight
ROW_T     = ROW_WK + HC            # (C_IN, HC) lane replication one-hot  T
ROW_W2O   = ROW_T + 8              # (D, D)     ff_w2 @ wo
ROW_WXO   = ROW_W2O + D            # (C_IN, D)  emb_w_s @ wo   (residual branch)
ROW_BY    = ROW_WXO + 8            # (BS, D)    all residual-path biases folded
ROW_B1    = ROW_BY + BS            # (1, D)     ff_b1
ROW_ALPHA = ROW_B1 + 1             # (1, D)     LN alpha broadcast
ROW_BETA  = ROW_ALPHA + 1          # (1, D)     LN beta broadcast
NROWS     = 520                    # padded to a multiple of 8


# ----------------------------- Pallas kernel -----------------------------------
def temporal_kernel(xm_ref, c_ref, out_ref):
    f32 = jnp.float32
    dot = lambda a, b: jnp.dot(a, b, preferred_element_type=f32)

    # ---- runtime input: rows 0:BS = x, rows BS:2BS = mask --------------------
    x_raw = xm_ref[0:BS, :]                                   # (BS, C_IN)
    m_raw = xm_ref[BS:2 * BS, :]                              # (BS, C_IN)
    x_m = jnp.where(m_raw == 0.0, f32(1e-9), x_raw)           # InputEmbeddings mask

    # ---- constants: static slices of the single lane-dense slab --------------
    a_mask = c_ref[ROW_AMASK:ROW_AMASK + R, 0:R]              # (R, R)
    st     = c_ref[ROW_ST:ROW_ST + BS, 0:R]                   # (BS, R)
    s_rep  = c_ref[ROW_S:ROW_S + R, 0:BS]                     # (R, BS)
    m_bd   = c_ref[ROW_MBD:ROW_MBD + R, 0:HC]                 # (R, HC)
    bq_p   = c_ref[ROW_BQ:ROW_BQ + R, 0:DK]                   # (R, DK)
    bk_p   = c_ref[ROW_BK:ROW_BK + R, 0:DK]                   # (R, DK)
    bv1    = c_ref[ROW_BV1:ROW_BV1 + R, 0:D]                  # (R, D)
    wv1    = c_ref[ROW_WV1:ROW_WV1 + HC, 0:D]                 # (HC, D)
    wq_p   = c_ref[ROW_WQ:ROW_WQ + HC, 0:DK]                  # (HC, DK)
    wk_p   = c_ref[ROW_WK:ROW_WK + HC, 0:DK]                  # (HC, DK)
    t_rep  = c_ref[ROW_T:ROW_T + C_IN, 0:HC]                  # (C_IN, HC)
    w2o    = c_ref[ROW_W2O:ROW_W2O + D, 0:D]                  # (D, D)
    w_x_o  = c_ref[ROW_WXO:ROW_WXO + C_IN, 0:D]               # (C_IN, D)
    b_y    = c_ref[ROW_BY:ROW_BY + BS, 0:D]                   # (BS, D)
    b1     = c_ref[ROW_B1:ROW_B1 + 1, 0:D]                    # (1, D)
    alpha  = c_ref[ROW_ALPHA:ROW_ALPHA + 1, 0:D]              # (1, D)
    beta   = c_ref[ROW_BETA:ROW_BETA + 1, 0:D]                # (1, D)

    # ---- block-diagonal head expansion of the masked input: (R, HC) ----------
    # x_bd[h*BS + i, h*C_IN + c] = x_m[i, c]; zero elsewhere (matmuls, no relayout)
    x_bd = dot(s_rep, dot(x_m, t_rep)) * m_bd

    # ---- head-packed Q/K and (V @ ff_w1) projections (emb/pe/scales folded) --
    q_p = dot(x_bd, wq_p) + bq_p                              # (R, DK)
    k_p = dot(x_bd, wk_p) + bk_p                              # (R, DK)
    vw1 = dot(x_bd, wv1) + bv1                                # (R, D) == V @ ff_w1

    # ---- one masked score matmul covering every (head, batch) block ----------
    scores = jax.lax.dot_general(q_p, k_p, (((1,), (1,)), ((), ())),
                                 preferred_element_type=f32) + a_mask
    scores = scores - jnp.max(scores, axis=-1, keepdims=True)
    e = jnp.exp(scores)
    p = e * pl.reciprocal(jnp.sum(e, axis=-1, keepdims=True), approx=False)

    # ---- attention*V*ff_w1, summed back over heads with one constant matmul --
    h1 = jnp.maximum(dot(st, dot(p, vw1)) + b1, 0.0)          # (BS, D)

    # ---- residual + MHA-output-FFN(2nd) + outer w_o, all folded host-side ----
    y = dot(x_m, w_x_o) + dot(h1, w2o) + b_y                  # (BS, D)

    # ---- LayerNormalization: scalar alpha/bias, unbiased std, (x-m)/(std+eps)
    mean = jnp.mean(y, axis=-1, keepdims=True)
    var = jnp.sum((y - mean) ** 2, axis=-1, keepdims=True) * (1.0 / (D - 1))
    inv = pl.reciprocal(jnp.sqrt(var) + EPS, approx=False)
    out_ref[...] = alpha * (y - mean) * inv + beta


# ----------------------------- host-side param packing (once) --------------------
def pack_params(params):
    (emb_w, emb_b, pe, wq, wk, wv,
     ff_w1, ff_b1, ff_w2, ff_b2, wo, bo, ln_params) = params
    f32 = jnp.float32

    emb_w_s = (emb_w * SQRT_D).astype(f32)                    # fold sqrt(d_model)
    bias_base = emb_b * SQRT_D + jnp.tile(pe, (B, 1))         # (BS, D): emb bias + PE
    wq_s = wq / SQRT_DK                                       # fold 1/sqrt(d_k)

    # embedding folded into the QKV / residual projections
    W_x_q = emb_w_s @ wq_s
    W_x_k = emb_w_s @ wk
    W_x_v = emb_w_s @ wv
    bq_full = bias_base @ wq_s
    bk_full = bias_base @ wk
    bv_full = bias_base @ wv

    heads = lambda a: jnp.concatenate([a[:, h * DK:(h + 1) * DK] for h in range(H)], axis=0)
    Wq_p, Wk_p = heads(W_x_q), heads(W_x_k)                   # (HC, DK)
    bq_p, bk_p = heads(bq_full), heads(bk_full)               # (R, DK)

    # block-diagonal V weight/bias, then fold ff_w1 (MHA w_o first layer)
    Wv_bd = jnp.zeros((HC, D), f32)
    bv_bd = jnp.zeros((R, D), f32)
    for h in range(H):
        Wv_bd = Wv_bd.at[h * C_IN:(h + 1) * C_IN, h * DK:(h + 1) * DK].set(
            W_x_v[:, h * DK:(h + 1) * DK])
        bv_bd = bv_bd.at[h * BS:(h + 1) * BS, h * DK:(h + 1) * DK].set(
            bv_full[:, h * DK:(h + 1) * DK])
    Wv1 = Wv_bd @ ff_w1                                       # (HC, D)
    bv1 = bv_bd @ ff_w1                                       # (R, D)

    # fold ff_w2 @ wo and all residual-path biases
    W2o = ff_w2 @ wo                                          # (D, D)
    W_x_o = emb_w_s @ wo                                      # (C_IN, D)
    b_y = bias_base @ wo + ff_b2 @ wo + bo                    # (BS, D)

    # structural constants (one-hot replication / masks)
    r = jnp.arange(R)
    S_rep = (r[:, None] % BS == jnp.arange(BS)[None, :]).astype(f32)          # (R, BS)
    ST = S_rep.T                                                               # (BS, R)
    T_rep = (jnp.arange(HC)[None, :] % C_IN == jnp.arange(C_IN)[:, None]).astype(f32)
    M_bd = (r[:, None] // BS == jnp.arange(HC)[None, :] // C_IN).astype(f32)   # (R, HC)
    A_mask = jnp.where(r[:, None] // S == r[None, :] // S, 0.0, NEG_INF).astype(f32)

    slab = jnp.zeros((NROWS, CW), f32)

    def put(s, row, blk):
        blk = jnp.asarray(blk, f32)
        return s.at[row:row + blk.shape[0], 0:blk.shape[1]].set(blk)

    slab = put(slab, ROW_AMASK, A_mask)
    slab = put(slab, ROW_ST, ST)
    slab = put(slab, ROW_S, S_rep)
    slab = put(slab, ROW_MBD, M_bd)
    slab = put(slab, ROW_BQ, bq_p)
    slab = put(slab, ROW_BK, bk_p)
    slab = put(slab, ROW_BV1, bv1)
    slab = put(slab, ROW_WV1, Wv1)
    slab = put(slab, ROW_WQ, Wq_p)
    slab = put(slab, ROW_WK, Wk_p)
    slab = put(slab, ROW_T, T_rep)
    slab = put(slab, ROW_W2O, W2o)
    slab = put(slab, ROW_WXO, W_x_o)
    slab = put(slab, ROW_BY, b_y)
    slab = put(slab, ROW_B1, ff_b1)
    slab = put(slab, ROW_ALPHA, jnp.full((1, D), ln_params[0], f32))
    slab = put(slab, ROW_BETA, jnp.full((1, D), ln_params[1], f32))
    return slab


# ----------------------------- wrapper ------------------------------------------
@jax.jit
def temporal_layer(x, mask, const_slab):
    # pack x + mask into one (2*BS, C_IN) array -> single input DMA
    xm = jnp.concatenate([x.reshape(BS, C_IN), mask.reshape(BS, C_IN)], axis=0)
    out = pl.pallas_call(
        temporal_kernel,
        out_shape=jax.ShapeDtypeStruct((BS, D), jnp.float32),
        in_specs=[pl.BlockSpec(memory_space=pltpu.MemorySpace.VMEM),
                  pl.BlockSpec(memory_space=pltpu.MemorySpace.VMEM)],
        out_specs=pl.BlockSpec(memory_space=pltpu.MemorySpace.VMEM),
    )(xm, const_slab)
    return out.reshape(B, S, D)


# ----------------------------- pure-JAX reference --------------------------------
def reference(x, mask, params):
    (emb_w, emb_b, pe, wq, wk, wv,
     ff_w1, ff_b1, ff_w2, ff_b2, wo, bo, ln_params) = params
    xm = jnp.where(mask == 0, 1e-9, x)
    emb = (xm @ emb_w + emb_b) * SQRT_D + pe[None]
    q = (emb @ wq).reshape(B, S, H, DK).transpose(0, 2, 1, 3)
    k = (emb @ wk).reshape(B, S, H, DK).transpose(0, 2, 1, 3)
    v = (emb @ wv).reshape(B, S, H, DK).transpose(0, 2, 1, 3)
    sc = jnp.einsum("bhqd,bhkd->bhqk", q, k) / SQRT_DK
    p = jax.nn.softmax(sc, axis=-1)
    att = jnp.einsum("bhqk,bhkd->bhqd", p, v).transpose(0, 2, 1, 3).reshape(B, S, D)
    att = jnp.maximum(att @ ff_w1 + ff_b1, 0.0) @ ff_w2 + ff_b2
    y = (emb + att) @ wo + bo
    mean = jnp.mean(y, axis=-1, keepdims=True)
    std = jnp.sqrt(jnp.sum((y - mean) ** 2, axis=-1, keepdims=True) / (D - 1))
    return ln_params[0] * (y - mean) / (std + EPS) + ln_params[1]


# ----------------------------- main ----------------------------------------------
if __name__ == "__main__":
    key = jax.random.PRNGKey(0)
    ks = jax.random.split(key, 12)

    x = jax.random.normal(ks[0], (B, S, C_IN), dtype=jnp.float32)
    mask = (jax.random.uniform(ks[1], (B, S, C_IN)) > 0.2).astype(jnp.float32)

    # deterministic parameter init (synthetic; matches module shapes)
    emb_w = jax.random.normal(ks[2], (C_IN, D), jnp.float32) * 0.1
    emb_b = jax.random.normal(ks[3], (1, D), jnp.float32) * 0.01
    wq = jax.random.normal(ks[4], (D, D), jnp.float32) * 0.1
    wk = jax.random.normal(ks[5], (D, D), jnp.float32) * 0.1
    wv = jax.random.normal(ks[6], (D, D), jnp.float32) * 0.1
    ff_w1 = jax.random.normal(ks[7], (D, D), jnp.float32) * 0.1   # MHA w_o FFN (d_ff==d_model)
    ff_b1 = jax.random.normal(ks[8], (1, D), jnp.float32) * 0.01
    ff_w2 = jax.random.normal(ks[9], (D, D), jnp.float32) * 0.1
    ff_b2 = jax.random.normal(ks[10], (1, D), jnp.float32) * 0.01
    wo = jax.random.normal(ks[11], (D, D), jnp.float32) * 0.1
    bo = jnp.zeros((1, D), jnp.float32)
    ln_params = jnp.array([1.0, 0.0], dtype=jnp.float32)          # alpha, bias

    # positional encoding buffer (same recipe as the PyTorch module)
    position = jnp.arange(S, dtype=jnp.float32)[:, None]
    _2i = jnp.arange(0, D, 2, dtype=jnp.float32)
    div = jnp.power(10000.0, _2i / D)
    pe = jnp.zeros((S, D), jnp.float32)
    pe = pe.at[:, 0::2].set(jnp.sin(position / div))
    pe = pe.at[:, 1::2].set(jnp.cos(position / div))

    params = (emb_w, emb_b, pe, wq, wk, wv,
              ff_w1, ff_b1, ff_w2, ff_b2, wo, bo, ln_params)

    const_slab = jax.block_until_ready(pack_params(params))      # host-side, once

    out = temporal_layer(x, mask, const_slab)
    jax.block_until_ready(out)

    ref = reference(x, mask, params)
    assert out.shape == (B, S, D)
    assert jnp.allclose(out, ref, atol=1e-4, rtol=1e-4), "mismatch vs JAX reference"

    print("KERNEL_OK")
</pallas_src>

<mosaic_0001>
module attributes {stable_mosaic.version = 11 : i64} {
  func.func @temporal_kernel(%arg0: memref<32x4xf32, #tpu.memory_space<vmem>>, %arg1: memref<520x64xf32, #tpu.memory_space<vmem>>, %arg2: memref<16x32xf32, #tpu.memory_space<vmem>>) attributes {dimension_semantics = [], scalar_prefetch = 0 : i64, scratch_operands = 0 : i64, tpu.core_type = #tpu.core_type<tc>} {
    %c0 = arith.constant 0 : index
    %c0_0 = arith.constant 0 : index
    %0 = vector.load %arg0[%c0, %c0_0] : memref<32x4xf32, #tpu.memory_space<vmem>>, vector<16x4xf32>
    %c16 = arith.constant 16 : index
    %c0_1 = arith.constant 0 : index
    %1 = vector.load %arg0[%c16, %c0_1] : memref<32x4xf32, #tpu.memory_space<vmem>>, vector<16x4xf32>
    %cst = arith.constant 0.000000e+00 : f32
    %2 = vector.broadcast %cst : f32 to vector<16x4xf32>
    %3 = arith.cmpf oeq, %1, %2 : vector<16x4xf32>
    %cst_2 = arith.constant 9.99999971E-10 : f32
    %4 = vector.broadcast %cst_2 : f32 to vector<16x4xf32>
    %5 = arith.select %3, %4, %0 : vector<16x4xi1>, vector<16x4xf32>
    %c0_3 = arith.constant 0 : index
    %c0_4 = arith.constant 0 : index
    %6 = vector.load %arg1[%c0_3, %c0_4] : memref<520x64xf32, #tpu.memory_space<vmem>>, vector<64x64xf32>
    %c64 = arith.constant 64 : index
    %c0_5 = arith.constant 0 : index
    %7 = vector.load %arg1[%c64, %c0_5] : memref<520x64xf32, #tpu.memory_space<vmem>>, vector<16x64xf32>
    %c80 = arith.constant 80 : index
    %c0_6 = arith.constant 0 : index
    %8 = vector.load %arg1[%c80, %c0_6] : memref<520x64xf32, #tpu.memory_space<vmem>>, vector<64x16xf32>
    %c144 = arith.constant 144 : index
    %c0_7 = arith.constant 0 : index
    %9 = vector.load %arg1[%c144, %c0_7] : memref<520x64xf32, #tpu.memory_space<vmem>>, vector<64x16xf32>
    %c208 = arith.constant 208 : index
    %c0_8 = arith.constant 0 : index
    %10 = vector.load %arg1[%c208, %c0_8] : memref<520x64xf32, #tpu.memory_space<vmem>>, vector<64x8xf32>
    %c272 = arith.constant 272 : index
    %c0_9 = arith.constant 0 : index
    %11 = vector.load %arg1[%c272, %c0_9] : memref<520x64xf32, #tpu.memory_space<vmem>>, vector<64x8xf32>
    %c336 = arith.constant 336 : index
    %c0_10 = arith.constant 0 : index
    %12 = vector.load %arg1[%c336, %c0_10] : memref<520x64xf32, #tpu.memory_space<vmem>>, vector<64x32xf32>
    %c400 = arith.constant 400 : index
    %c0_11 = arith.constant 0 : index
    %13 = vector.load %arg1[%c400, %c0_11] : memref<520x64xf32, #tpu.memory_space<vmem>>, vector<16x32xf32>
    %c416 = arith.constant 416 : index
    %c0_12 = arith.constant 0 : index
    %14 = vector.load %arg1[%c416, %c0_12] : memref<520x64xf32, #tpu.memory_space<vmem>>, vector<16x8xf32>
    %c432 = arith.constant 432 : index
    %c0_13 = arith.constant 0 : index
    %15 = vector.load %arg1[%c432, %c0_13] : memref<520x64xf32, #tpu.memory_space<vmem>>, vector<16x8xf32>
    %c448 = arith.constant 448 : index
    %c0_14 = arith.constant 0 : index
    %16 = vector.load %arg1[%c448, %c0_14] : memref<520x64xf32, #tpu.memory_space<vmem>>, vector<4x16xf32>
    %c456 = arith.constant 456 : index
    %c0_15 = arith.constant 0 : index
    %17 = vector.load %arg1[%c456, %c0_15] : memref<520x64xf32, #tpu.memory_space<vmem>>, vector<32x32xf32>
    %c488 = arith.constant 488 : index
    %c0_16 = arith.constant 0 : index
    %18 = vector.load %arg1[%c488, %c0_16] : memref<520x64xf32, #tpu.memory_space<vmem>>, vector<4x32xf32>
    %c496 = arith.constant 496 : index
    %c0_17 = arith.constant 0 : index
    %19 = vector.load %arg1[%c496, %c0_17] : memref<520x64xf32, #tpu.memory_space<vmem>>, vector<16x32xf32>
    %c512 = arith.constant 512 : index
    %c0_18 = arith.constant 0 : index
    %20 = vector.load %arg1[%c512, %c0_18] : memref<520x64xf32, #tpu.memory_space<vmem>>, vector<1x32xf32>
    %c513 = arith.constant 513 : index
    %c0_19 = arith.constant 0 : index
    %21 = vector.load %arg1[%c513, %c0_19] : memref<520x64xf32, #tpu.memory_space<vmem>>, vector<1x32xf32>
    %c514 = arith.constant 514 : index
    %c0_20 = arith.constant 0 : index
    %22 = vector.load %arg1[%c514, %c0_20] : memref<520x64xf32, #tpu.memory_space<vmem>>, vector<1x32xf32>
    %cst_21 = arith.constant dense<0.000000e+00> : vector<16x16xf32>
    %23 = tpu.matmul %5, %16, %cst_21 {dimension_numbers = #tpu.dot_dimension_numbers<[1], [0], [0], [1], [0, 0, 1, 1], [], []>} : vector<16x4xf32>, vector<4x16xf32>, vector<16x16xf32> -> vector<16x16xf32>
    %cst_22 = arith.constant dense<0.000000e+00> : vector<64x16xf32>
    %24 = tpu.matmul %8, %23, %cst_22 {dimension_numbers = #tpu.dot_dimension_numbers<[1], [0], [0], [1], [0, 0, 1, 1], [], []>} : vector<64x16xf32>, vector<16x16xf32>, vector<64x16xf32> -> vector<64x16xf32>
    %25 = arith.mulf %24, %9 : vector<64x16xf32>
    %cst_23 = arith.constant dense<0.000000e+00> : vector<64x8xf32>
    %26 = tpu.matmul %25, %14, %cst_23 {dimension_numbers = #tpu.dot_dimension_numbers<[1], [0], [0], [1], [0, 0, 1, 1], [], []>} : vector<64x16xf32>, vector<16x8xf32>, vector<64x8xf32> -> vector<64x8xf32>
    %27 = arith.addf %26, %10 : vector<64x8xf32>
    %cst_24 = arith.constant dense<0.000000e+00> : vector<64x8xf32>
    %28 = tpu.matmul %25, %15, %cst_24 {dimension_numbers = #tpu.dot_dimension_numbers<[1], [0], [0], [1], [0, 0, 1, 1], [], []>} : vector<64x16xf32>, vector<16x8xf32>, vector<64x8xf32> -> vector<64x8xf32>
    %29 = arith.addf %28, %11 : vector<64x8xf32>
    %cst_25 = arith.constant dense<0.000000e+00> : vector<64x32xf32>
    %30 = tpu.matmul %25, %13, %cst_25 {dimension_numbers = #tpu.dot_dimension_numbers<[1], [0], [0], [1], [0, 0, 1, 1], [], []>} : vector<64x16xf32>, vector<16x32xf32>, vector<64x32xf32> -> vector<64x32xf32>
    %31 = arith.addf %30, %12 : vector<64x32xf32>
    %cst_26 = arith.constant dense<0.000000e+00> : vector<64x64xf32>
    %32 = tpu.matmul %27, %29, %cst_26 {dimension_numbers = #tpu.dot_dimension_numbers<[1], [1], [0], [0], [0, 0, 1, 0], [], []>} : vector<64x8xf32>, vector<64x8xf32>, vector<64x64xf32> -> vector<64x64xf32>
    %33 = arith.addf %32, %6 : vector<64x64xf32>
    %cst_27 = arith.constant dense<0xFF800000> : vector<64xf32>
    %34 = vector.multi_reduction <maximumf>, %33, %cst_27 [1] : vector<64x64xf32> to vector<64xf32>
    %35 = vector.shape_cast %34 : vector<64xf32> to vector<64x1xf32>
    %36 = vector.broadcast %35 : vector<64x1xf32> to vector<64x64xf32>
    %37 = arith.subf %33, %36 : vector<64x64xf32>
    %38 = math.exp %37 : vector<64x64xf32>
    %cst_28 = arith.constant dense<0.000000e+00> : vector<64xf32>
    %39 = vector.multi_reduction <add>, %38, %cst_28 [1] : vector<64x64xf32> to vector<64xf32>
    %40 = vector.shape_cast %39 : vector<64xf32> to vector<64x1xf32>
    %41 = tpu.reciprocal %40 : vector<64x1xf32> -> vector<64x1xf32>
    %42 = vector.broadcast %41 : vector<64x1xf32> to vector<64x64xf32>
    %43 = arith.mulf %38, %42 : vector<64x64xf32>
    %cst_29 = arith.constant dense<0.000000e+00> : vector<64x32xf32>
    %44 = tpu.matmul %43, %31, %cst_29 {dimension_numbers = #tpu.dot_dimension_numbers<[1], [0], [0], [1], [0, 0, 1, 1], [], []>} : vector<64x64xf32>, vector<64x32xf32>, vector<64x32xf32> -> vector<64x32xf32>
    %cst_30 = arith.constant dense<0.000000e+00> : vector<16x32xf32>
    %45 = tpu.matmul %7, %44, %cst_30 {dimension_numbers = #tpu.dot_dimension_numbers<[1], [0], [0], [1], [0, 0, 1, 1], [], []>} : vector<16x64xf32>, vector<64x32xf32>, vector<16x32xf32> -> vector<16x32xf32>
    %46 = vector.broadcast %20 : vector<1x32xf32> to vector<16x32xf32>
    %47 = arith.addf %45, %46 : vector<16x32xf32>
    %cst_31 = arith.constant 0.000000e+00 : f32
    %48 = vector.broadcast %cst_31 : f32 to vector<16x32xf32>
    %49 = arith.maximumf %47, %48 : vector<16x32xf32>
    %cst_32 = arith.constant dense<0.000000e+00> : vector<16x32xf32>
    %50 = tpu.matmul %5, %18, %cst_32 {dimension_numbers = #tpu.dot_dimension_numbers<[1], [0], [0], [1], [0, 0, 1, 1], [], []>} : vector<16x4xf32>, vector<4x32xf32>, vector<16x32xf32> -> vector<16x32xf32>
    %cst_33 = arith.constant dense<0.000000e+00> : vector<16x32xf32>
    %51 = tpu.matmul %49, %17, %cst_33 {dimension_numbers = #tpu.dot_dimension_numbers<[1], [0], [0], [1], [0, 0, 1, 1], [], []>} : vector<16x32xf32>, vector<32x32xf32>, vector<16x32xf32> -> vector<16x32xf32>
    %52 = arith.addf %50, %51 : vector<16x32xf32>
    %53 = arith.addf %52, %19 : vector<16x32xf32>
    %cst_34 = arith.constant dense<0.000000e+00> : vector<16xf32>
    %54 = vector.multi_reduction <add>, %53, %cst_34 [1] : vector<16x32xf32> to vector<16xf32>
    %55 = vector.shape_cast %54 : vector<16xf32> to vector<16x1xf32>
    %cst_35 = arith.constant 3.200000e+01 : f32
    %56 = vector.broadcast %cst_35 : f32 to vector<16x1xf32>
    %57 = arith.divf %55, %56 : vector<16x1xf32>
    %58 = vector.broadcast %57 : vector<16x1xf32> to vector<16x32xf32>
    %59 = arith.subf %53, %58 : vector<16x32xf32>
    %60 = arith.mulf %59, %59 : vector<16x32xf32>
    %cst_36 = arith.constant dense<0.000000e+00> : vector<16xf32>
    %61 = vector.multi_reduction <add>, %60, %cst_36 [1] : vector<16x32xf32> to vector<16xf32>
    %62 = vector.shape_cast %61 : vector<16xf32> to vector<16x1xf32>
    %cst_37 = arith.constant 0.0322580636 : f32
    %63 = vector.broadcast %cst_37 : f32 to vector<16x1xf32>
    %64 = arith.mulf %62, %63 : vector<16x1xf32>
    %65 = math.sqrt %64 : vector<16x1xf32>
    %cst_38 = arith.constant 9.99999997E-7 : f32
    %66 = vector.broadcast %cst_38 : f32 to vector<16x1xf32>
    %67 = arith.addf %65, %66 : vector<16x1xf32>
    %68 = tpu.reciprocal %67 : vector<16x1xf32> -> vector<16x1xf32>
    %69 = vector.broadcast %57 : vector<16x1xf32> to vector<16x32xf32>
    %70 = arith.subf %53, %69 : vector<16x32xf32>
    %71 = vector.broadcast %21 : vector<1x32xf32> to vector<16x32xf32>
    %72 = arith.mulf %71, %70 : vector<16x32xf32>
    %73 = vector.broadcast %68 : vector<16x1xf32> to vector<16x32xf32>
    %74 = arith.mulf %72, %73 : vector<16x32xf32>
    %75 = vector.broadcast %22 : vector<1x32xf32> to vector<16x32xf32>
    %76 = arith.addf %74, %75 : vector<16x32xf32>
    %c0_39 = arith.constant 0 : index
    %c0_40 = arith.constant 0 : index
    %77 = vector.load %arg2[%c0_39, %c0_40] : memref<16x32xf32, #tpu.memory_space<vmem>>, vector<16x32xf32>
    tpu.vector_store %arg2[%c0_39, %c0_40], %76 {strides = array<i32>} : memref<16x32xf32, #tpu.memory_space<vmem>>, vector<16x32xf32>,
    return
  }
}

</mosaic_0001>

<bundles_post_ra>
// kernel: temporal_layer.1
= control target key start
LH: loop header
LB: loop body
LE: loop exit
PB: predicated region body
PF: predicated region fallthrough
CT: control target
= control target key end

     0   :  { %vm94_vm0 = vcmask 1043456   ;;  %vm87_vm1 = vcmask 31744   ;;  %s2187_s0 = inlined_call_operand.vmem [shape: f32[32,4], index: 0, kind: input, shape index: {}]   ;;  %s2188_s1 = inlined_call_operand.vmem [shape: f32[520,64], index: 1, kind: input, shape index: {}]   ;;  %s2189_s2 = inlined_call_operand.hbm [shape: f32[16,32], index: 2, kind: output, shape index: {}]  }
   0x1   :  { %v76_v0 = vld [vmem:[%s2188_s1 + $0x1c0] sm:$0xf]  ;;  %v14_v2 = vld [vmem:[%s2187_s0 + $0x10] sm:$0xff]  ;;  %v13_v3 = vld [vmem:[%s2187_s0 + $0x8] sm:$0xff] }
   0x2   :  { %v12_v1 = vld [vmem:[%s2187_s0] sm:$0xff]  ;;  %1505 = vmatprep.subr.msk.mxu0 %vm94_vm0, %v76_v0  ;;  %vm16_vm2 = vcmp.eq.f32.partialorder %v14_v2, 0.0  ;;  %v15_v4 = vld [vmem:[%s2187_s0 + $0x18] sm:$0xff] }
   0x3   :  { %7 = vsyncpa [#allocation3], 0  ;;  %1506 = vmatpush3.msk.msra.mxu0 %vm94_vm0, %v76_v0  ;;  %v1849_v5 = vsel %vm16_vm2, 1e-09, %v12_v1  ;;  %vm17_vm3 = vcmp.eq.f32.partialorder %v15_v4, 0.0  ;;  %v30_v7 = vld [vmem:[%s2188_s1 + $0x50] sm:$0xff] }
   0x4   :  { %1507 = vmatprep.mubr.msk.f32.mxu0 %vm87_vm1, %v1849_v5  ;;  %v1853_v6 = vsel %vm17_vm3, 1e-09, %v13_v3  ;;  %vm173_vm4 = vcmask 130048   ;;  %v74_v8 = vld [vmem:[%s2188_s1 + $0x1b0] sm:$0xff]  ;;  %v75_v9 = vld [vmem:[%s2188_s1 + $0x1b8] sm:$0xff]  ;;  %v32_v15 = vld [vmem:[%s2188_s1 + $0x60] sm:$0xff] }
   0x5   :  { %1508 = vmatmul.mubr.msk.f32.vlgmr.msra.gmra.mrb[0].mxu0 %vm87_vm1, %v1853_v6  ;;  %1514 = vmatprep.mubr.msk.f32.mxu1 %vm173_vm4, %v30_v7  ;;  %v1673_v13 = vpack.c.bf16 %v75_v9, %v74_v8  ;;  %v31_v14 = vld [vmem:[%s2188_s1 + $0x58] sm:$0xff]  ;;  %v33_v16 = vld [vmem:[%s2188_s1 + $0x68] sm:$0xff]  ;;  %v34_v17 = vld [vmem:[%s2188_s1 + $0x70] sm:$0xff]  ;;  %vm650_vm5 = vcmask 64512   ;;  %vm804_vm7 = vcmask 523264   ;;  %vm1109_vm8 = vcmask 261120  }
   0x6   :  { %v35_v18 = vld [vmem:[%s2188_s1 + $0x78] sm:$0xff]  ;;  %v36_v19 = vld [vmem:[%s2188_s1 + $0x80] sm:$0xff]  ;;  %v37_v20 = vld [vmem:[%s2188_s1 + $0x88] sm:$0xff]  ;;  %s1814_s6 = smov [#allocation2]  }
   0x7   :  { %v72_v21 = vld [vmem:[%s2188_s1 + $0x1a0] sm:$0xff]  ;;  %v73_v22 = vld [vmem:[%s2188_s1 + $0x1a8] sm:$0xff]  ;;  %v70_v24 = vld [vmem:[%s2188_s1 + $0x190] sm:$0xff]  ;;  %s1331_s7 = sshll.u32 %s1814_s6, 4  ;;  %s1332_s7 = int_to_ptr.vmem [resolvable:$true] %s1331_s7 }
   0x8   :  { %v1669_v23 = vpack.c.bf16 %v73_v22, %v72_v21  ;;  %v71_v25 = vld [vmem:[%s2188_s1 + $0x198] sm:$0xff]  ;;  %v38_v27 = vld [vmem:[%s2188_s1 + $0x90] sm:$0xff]  ;;  %v41_v32 = vld [vmem:[%s2188_s1 + $0xa8] sm:$0xff]  ;;  %s1790_s8 = scalar_lea.vmem %s1332_s7, 256  ;;  %p1795_p1 = scmp.lt.s32.totalorder %s1332_s7, %s1332_s7 }
   0x9   :  { %v1677_v26 = vpack.c.bf16 %v71_v25, %v70_v24  ;;  %v39_v28 = vld [vmem:[%s2188_s1 + $0x98] sm:$0xff]  ;;  %v40_v34 = vld [vmem:[%s2188_s1 + $0xa0] sm:$0xff]  ;;  %v42_v40 = vld [vmem:[%s2188_s1 + $0xb0] sm:$0xff]  ;;  %p1791_p0 = scmp.ne.s32.totalorder %s1332_s7, %s1790_s8  ;;  %p1796_p2 = scmp.lt.s32.totalorder %s1790_s8, %s1790_s8 }
   0xa   :  { %1670 = vmatprep.subr.bf16.mxu0 %v1669_v23  ;;  %v43_v39 = vld [vmem:[%s2188_s1 + $0xb8] sm:$0xff]  ;;  %v45_v45 = vld [vmem:[%s2188_s1 + $0xc8] sm:$0xff]  ;;  %v44_v46 = vld [vmem:[%s2188_s1 + $0xc0] sm:$0xff] }
   0xb   :  { %1672 = vmatpush3.bf16.msra.mxu0 %v1669_v23  ;;  %v55_v51 = vld [vmem:[%s2188_s1 + $0x118] sm:$0xff]  ;;  %v46_v52 = vld [vmem:[%s2188_s1 + $0xd0] sm:$0xff]  ;;  %v57_v61 = vld [vmem:[%s2188_s1 + $0x128] sm:$0xff]  ;;  %p1797_p3 = por %p1796_p2, %p1795_p1 }
   0xc   :  { %1678 = vmatprep.subr.bf16.mxu0 %v1677_v26  ;;  %v54_v53 = vld [vmem:[%s2188_s1 + $0x110] sm:$0xff]  ;;  %v56_v62 = vld [vmem:[%s2188_s1 + $0x120] sm:$0xff]  ;;  %vm1974_vm6 = vmpackc.low %vm650_vm5, %vm650_vm5 }
   0xd   :  { %v59_v9 = vld [vmem:[%s2188_s1 + $0x138] sm:$0xff]  ;;  %p1798_p4 = pnand %p1797_p3, %p1791_p0 }
  0xd8   :  { %v1509_v10 = vpop.f32.mrb[0].mxu0 }
  0xd9   :  { %v164_v11 = vpop.f32.mrb[1].mxu0 }
  0xda   :  { %v1665_v12 = vpack.c.bf16 %v1509_v10, %v164_v11  ;;  %v58_v10 = vld [vmem:[%s2188_s1 + $0x130] sm:$0xff] }
  0xdc   :  { %1666 = vmatprep.subr.bf16.mxu1 %v1665_v12 }
  0xdd   :  { %1668 = vmatpush3.bf16.msra.mxu1 %v1665_v12 }
  0xde   :  { %1674 = vmatprep.subr.bf16.mxu1 %v1673_v13 }
  0xe0   :  { %1515 = vmatmul.mubr.msk.f32.vlgmr.msra.gmra.mrb[0].mxu1 %vm173_vm4, %v31_v14 }
  0xe1   :  { %1517 = vmatprep.mubr.msk.f32.mxu1 %vm173_vm4, %v32_v15  ;;  %1676 = vmatpush3.bf16.msra.mxu1 %v1673_v13 }
  0xe4   :  { %1518 = vmatmul.mubr.msk.f32.gmra.mrb[2].mxu1 %vm173_vm4, %v33_v16 }
  0xe5   :  { %1520 = vmatprep.mubr.msk.f32.mxu1 %vm173_vm4, %v34_v17 }
  0xe8   :  { %1521 = vmatmul.mubr.msk.f32.gmra.mrb[4].mxu1 %vm173_vm4, %v35_v18  ;;  %v61_v18 = vld [vmem:[%s2188_s1 + $0x148] sm:$0xff] }
  0xe9   :  { %1523 = vmatprep.mubr.msk.f32.mxu1 %vm173_vm4, %v36_v19  ;;  %v60_v19 = vld [vmem:[%s2188_s1 + $0x140] sm:$0xff] }
  0xec   :  { %1524 = vmatmul.mubr.msk.f32.gmra.mrb[6].mxu1 %vm173_vm4, %v37_v20 }
 0x1b3   :  { %v1516_v29 = vpop.f32.mrb[0].mxu1 }
 0x1b4   :  { %v264_v30 = vpop.f32.mrb[1].mxu1  ;;  %v304_v33 = vmul.f32 %v1516_v29, %v39_v28  ;;  %v62_v28 = vld [vmem:[%s2188_s1 + $0x150] sm:$0xff] }
 0x1b5   :  { %v303_v31 = vmul.f32 %v264_v30, %v38_v27 }
 0x1b7   :  { %v1519_v35 = vpop.f32.mrb[2].mxu1  ;;  %1530 = vmatprep.mubr.msk.f32.mxu0 %vm173_vm4, %v303_v31  ;;  %1546 = vmatprep.mubr.msk.f32.mxu1 %vm173_vm4, %v303_v31 }
 0x1b8   :  { %v306_v36 = vmul.f32 %v1519_v35, %v41_v32  ;;  %v274_v37 = vpop.f32.mrb[3].mxu1  ;;  %1531 = vmatmul.mubr.msk.f32.vlgmr.msra.gmra.mrb[2].mxu0 %vm173_vm4, %v304_v33  ;;  %1547 = vmatmul.mubr.msk.f32.vlgmr.msra.gmra.mrb[8].mxu1 %vm173_vm4, %v304_v33  ;;  %v64_v35 = vld [vmem:[%s2188_s1 + $0x160] sm:$0xff] }
 0x1b9   :  { %v305_v38 = vmul.f32 %v274_v37, %v40_v34  ;;  %1680 = vmatpush3.bf16.msra.mxu0 %v1677_v26  ;;  %v63_v26 = vld [vmem:[%s2188_s1 + $0x158] sm:$0xff]  ;;  %v65_v34 = vld [vmem:[%s2188_s1 + $0x168] sm:$0xff] }
 0x1bb   :  { %v1522_v41 = vpop.f32.mrb[4].mxu1  ;;  %1533 = vmatprep.mubr.msk.f32.mxu0 %vm173_vm4, %v305_v38  ;;  %1549 = vmatprep.mubr.msk.f32.mxu1 %vm173_vm4, %v305_v38 }
 0x1bc   :  { %v308_v42 = vmul.f32 %v1522_v41, %v43_v39  ;;  %v284_v43 = vpop.f32.mrb[5].mxu1  ;;  %1534 = vmatmul.mubr.msk.f32.gmra.mrb[4].mxu0 %vm173_vm4, %v306_v36  ;;  %1550 = vmatmul.mubr.msk.f32.gmra.mrb[10].mxu1 %vm173_vm4, %v306_v36  ;;  %v67_v41 = vld [vmem:[%s2188_s1 + $0x178] sm:$0xff] }
 0x1bd   :  { %v307_v44 = vmul.f32 %v284_v43, %v42_v40 }
 0x1bf   :  { %v1525_v47 = vpop.f32.mrb[6].mxu1  ;;  %1536 = vmatprep.mubr.msk.f32.mxu0 %vm173_vm4, %v307_v44  ;;  %1552 = vmatprep.mubr.msk.f32.mxu1 %vm173_vm4, %v307_v44 }
 0x1c0   :  { %v310_v48 = vmul.f32 %v1525_v47, %v45_v45  ;;  %v294_v49 = vpop.f32.mrb[7].mxu1  ;;  %1537 = vmatmul.mubr.msk.f32.gmra.mrb[6].mxu0 %vm173_vm4, %v308_v42  ;;  %1553 = vmatmul.mubr.msk.f32.gmra.mrb[12].mxu1 %vm173_vm4, %v308_v42 }
 0x1c1   :  { %v309_v50 = vmul.f32 %v294_v49, %v44_v46  ;;  %v68_v49 = vld [vmem:[%s2188_s1 + $0x180] sm:$0xff] }
 0x1c3   :  { %1539 = vmatprep.mubr.msk.f32.mxu0 %vm173_vm4, %v309_v50  ;;  %1555 = vmatprep.mubr.msk.f32.mxu1 %vm173_vm4, %v309_v50 }
 0x1c4   :  { %1540 = vmatmul.mubr.msk.f32.gmra.mrb[8].mxu0 %vm173_vm4, %v310_v48  ;;  %1556 = vmatmul.mubr.msk.f32.gmra.mrb[14].mxu1 %vm173_vm4, %v310_v48 }
 0x1c5   :  { %1562 = vmatprep.mubr.msk.f32.mxu0 %vm173_vm4, %v303_v31 }
 0x1c8   :  { %1563 = vmatmul.mubr.msk.f32.vlgmr.msra.gmra.mrb[10].mxu0 %vm173_vm4, %v304_v33 }
 0x1c9   :  { %1565 = vmatprep.mubr.msk.f32.mxu0 %vm173_vm4, %v305_v38 }
 0x1cc   :  { %1566 = vmatmul.mubr.msk.f32.gmra.mrb[12].mxu0 %vm173_vm4, %v306_v36 }
 0x1cd   :  { %1568 = vmatprep.mubr.msk.f32.mxu0 %vm173_vm4, %v307_v44 }
 0x1d0   :  { %1569 = vmatmul.mubr.msk.f32.gmra.mrb[14].mxu0 %vm173_vm4, %v308_v42  ;;  %v66_v42 = vld [vmem:[%s2188_s1 + $0x170] sm:$0xff] }
 0x1d1   :  { %1571 = vmatprep.mubr.msk.f32.mxu0 %vm173_vm4, %v309_v50 }
 0x1d4   :  { %1572 = vmatmul.mubr.msk.f32.gmra.mrb[16].mxu0 %vm173_vm4, %v310_v48  ;;  %v69_v48 = vld [vmem:[%s2188_s1 + $0x188] sm:$0xff] }
 0x28b   :  { %v1964_v54 = vpop.f32.mrb[2].mxu0  ;;  %v1548_v55 = vpop.f32.mrb[8].mxu1 }
 0x28c   :  { %v512_v56 = vadd.f32 %v1548_v55, %v55_v51  ;;  %v401_v57 = vpop.f32.mrb[3].mxu0  ;;  %v506_v58 = vpop.f32.mrb[9].mxu1 }
 0x28d   :  { %v402_v59 = vadd.f32 %v401_v57, %v46_v52  ;;  %v507_v60 = vadd.f32 %v506_v58, %v54_v53  ;;  %v47_v57 = vld [vmem:[%s2188_s1 + $0xd8] sm:$0xff]  ;;  %v48_v58 = vld [vmem:[%s2188_s1 + $0xe0] sm:$0xff] }
 0x28f   :  { %v1681_v0 = vpack.c.bf16 %v512_v56, %v507_v60  ;;  %1590 = vmatprep.mubr.msk.f32.mxu1 %vm650_vm5, %v402_v59  ;;  %v1979_v1 = vpop.f32.mrb[4].mxu0  ;;  %v1551_v2 = vpop.f32.mrb[10].mxu1  ;;  %v407_v59 = vadd.f32 %v1964_v54, %v47_v57  ;;  %v49_v60 = vld [vmem:[%s2188_s1 + $0xe8] sm:$0xff]  ;;  %v51_v54 = vld [vmem:[%s2188_s1 + $0xf8] sm:$0xff] }
 0x290   :  { %v522_v3 = vadd.f32 %v1551_v2, %v57_v61  ;;  %v1981_v4 = vpop.f32.mrb[5].mxu0  ;;  %v516_v7 = vpop.f32.mrb[11].mxu1  ;;  %v417_v63 = vadd.f32 %v1979_v1, %v49_v60  ;;  %v52_v2 = vld [vmem:[%s2188_s1 + $0x100] sm:$0xff]  ;;  %v53_v1 = vld [vmem:[%s2188_s1 + $0x108] sm:$0xff] }
 0x291   :  { %v517_v8 = vadd.f32 %v516_v7, %v56_v62  ;;  %1683 = vmatprep.subr.msk.bf16.mxu1 %vm1974_vm6, %v1681_v0  ;;  %v412_v61 = vadd.f32 %v1981_v4, %v48_v58  ;;  %v50_v62 = vld [vmem:[%s2188_s1 + $0xf0] sm:$0xff] }
 0x292   :  { %1686 = vmatpush3.bf16.xpose.msk.msra.mxu1 %vm1974_vm6, %v1681_v0 }
 0x293   :  { %v1687_v11 = vpack.c.bf16 %v522_v3, %v517_v8  ;;  %v1993_v12 = vpop.f32.mrb[6].mxu0  ;;  %v1554_v13 = vpop.f32.mrb[12].mxu1  ;;  %v20_v8 = vld [vmem:[%s2188_s1] sm:$0xff] }
 0x294   :  { %v1995_v14 = vpop.f32.mrb[7].mxu0  ;;  %v532_v15 = vadd.f32 %v1554_v13, %v59_v9  ;;  %v526_v16 = vpop.f32.mrb[13].mxu1  ;;  %v427_v3 = vadd.f32 %v1993_v12, %v51_v54  ;;  %v22_v13 = vld [vmem:[%s2188_s1 + $0x10] sm:$0xff] }
 0x295   :  { %1689 = vmatprep.subr.msk.bf16.mxu1 %vm1974_vm6, %v1687_v11  ;;  %v527_v17 = vadd.f32 %v526_v16, %v58_v10  ;;  %v422_v0 = vadd.f32 %v1995_v14, %v50_v62  ;;  %v21_v10 = vld [vmem:[%s2188_s1 + $0x8] sm:$0xff] }
 0x297   :  { %v2005_v20 = vpop.f32.mrb[8].mxu0  ;;  %v1693_v21 = vpack.c.bf16 %v532_v15, %v527_v17  ;;  %v1557_v22 = vpop.f32.mrb[14].mxu1  ;;  %v23_v17 = vld [vmem:[%s2188_s1 + $0x18] sm:$0xff] }
 0x298   :  { %v431_v23 = vpop.f32.mrb[9].mxu0  ;;  %v542_v24 = vadd.f32 %v1557_v22, %v61_v18  ;;  %v536_v25 = vpop.f32.mrb[15].mxu1  ;;  %v437_v7 = vadd.f32 %v2005_v20, %v53_v1  ;;  %v24_v20 = vld [vmem:[%s2188_s1 + $0x20] sm:$0xff] }
 0x299   :  { %v537_v27 = vadd.f32 %v536_v25, %v60_v19  ;;  %v432_v4 = vadd.f32 %v431_v23, %v52_v2  ;;  %v25_v25 = vld [vmem:[%s2188_s1 + $0x28] sm:$0xff] }
 0x29a   :  { %1692 = vmatpush3.bf16.xpose.msk.msra.mxu1 %vm1974_vm6, %v1687_v11 }
 0x29b   :  { %v1564_v29 = vpop.f32.mrb[10].mxu0  ;;  %1695 = vmatprep.subr.msk.bf16.mxu1 %vm1974_vm6, %v1693_v21  ;;  %v1699_v30 = vpack.c.bf16 %v542_v24, %v537_v27 }
 0x29c   :  { %v617_v31 = vadd.f32 %v1564_v29, %v63_v26  ;;  %v611_v32 = vpop.f32.mrb[11].mxu0 }
 0x29d   :  { %v612_v33 = vadd.f32 %v611_v32, %v62_v28  ;;  %v26_v28 = vld [vmem:[%s2188_s1 + $0x30] sm:$0xff] }
 0x29f   :  { %v1705_v36 = vpack.c.bf16 %v617_v31, %v612_v33  ;;  %v1567_v37 = vpop.f32.mrb[12].mxu0  ;;  %v27_v33 = vld [vmem:[%s2188_s1 + $0x38] sm:$0xff] }
 0x2a0   :  { %v627_v38 = vadd.f32 %v1567_v37, %v65_v34  ;;  %v621_v39 = vpop.f32.mrb[13].mxu0 }
 0x2a1   :  { %v622_v40 = vadd.f32 %v621_v39, %v64_v35  ;;  %1706 = vmatprep.subr.bf16.mxu0 %v1705_v36 }
 0x2a2   :  { %1698 = vmatpush3.bf16.xpose.msk.msra.mxu1 %vm1974_vm6, %v1693_v21  ;;  %1708 = vmatpush3.bf16.msra.mxu0 %v1705_v36 }
 0x2a3   :  { %v1709_v43 = vpack.c.bf16 %v627_v38, %v622_v40  ;;  %v1570_v44 = vpop.f32.mrb[14].mxu0  ;;  %1701 = vmatprep.subr.msk.bf16.mxu1 %vm1974_vm6, %v1699_v30 }
 0x2a4   :  { %v637_v45 = vadd.f32 %v1570_v44, %v67_v41  ;;  %v631_v46 = vpop.f32.mrb[15].mxu0 }
 0x2a5   :  { %v632_v47 = vadd.f32 %v631_v46, %v66_v42  ;;  %1710 = vmatprep.subr.bf16.mxu0 %v1709_v43 }
 0x2a6   :  { %1712 = vmatpush3.bf16.msra.mxu0 %v1709_v43 }
 0x2a7   :  { %v1713_v50 = vpack.c.bf16 %v637_v45, %v632_v47  ;;  %v1573_v51 = vpop.f32.mrb[16].mxu0 }
 0x2a8   :  { %v647_v52 = vadd.f32 %v1573_v51, %v69_v48  ;;  %v641_v53 = vpop.f32.mrb[17].mxu0 }
 0x2a9   :  { %v642_v55 = vadd.f32 %v641_v53, %v68_v49  ;;  %1714 = vmatprep.subr.bf16.mxu0 %v1713_v50 }
 0x2aa   :  { %1704 = vmatpush3.bf16.xpose.msk.msra.mxu1 %vm1974_vm6, %v1699_v30  ;;  %1716 = vmatpush3.bf16.msra.mxu0 %v1713_v50 }
 0x2ab   :  { %v1717_v56 = vpack.c.bf16 %v647_v52, %v642_v55 }
 0x2ad   :  { %1718 = vmatprep.subr.bf16.mxu0 %v1717_v56 }
 0x2ae   :  { %1720 = vmatpush3.bf16.msra.mxu0 %v1717_v56 }
 0x2b1   :  { %1591 = vmatmul.mubr.msk.f32.vlgmr.msra.gmra.mrb[16].mxu1 %vm650_vm5, %v407_v59 }
 0x2b2   :  { %1593 = vmatprep.mubr.msk.f32.mxu1 %vm650_vm5, %v412_v61 }
 0x2b5   :  { %1594 = vmatmul.mubr.msk.f32.gmra.mrb[18].mxu1 %vm650_vm5, %v417_v63 }
 0x2b6   :  { %1596 = vmatprep.mubr.msk.f32.mxu1 %vm650_vm5, %v422_v0 }
 0x2b9   :  { %1597 = vmatmul.mubr.msk.f32.gmra.mrb[20].mxu1 %vm650_vm5, %v427_v3 }
 0x2ba   :  { %1599 = vmatprep.mubr.msk.f32.mxu1 %vm650_vm5, %v432_v4 }
 0x2bd   :  { %1600 = vmatmul.mubr.msk.f32.gmra.mrb[22].mxu1 %vm650_vm5, %v437_v7 }
 0x384   :  { %v1592_v9 = vpop.f32.mrb[16].mxu1 }
 0x385   :  { %v765_v11 = vpop.f32.mrb[17].mxu1  ;;  %v771_v14 = vadd.f32 %v1592_v9, %v21_v10 }
 0x386   :  { %v766_v12 = vadd.f32 %v765_v11, %v20_v8 }
 0x387   :  { %v808_v24 = vsel %vm804_vm7, %v771_v14, -inf }
 0x388   :  { %v1595_v15 = vpop.f32.mrb[18].mxu1  ;;  %v805_v16 = vsel %vm804_vm7, %v766_v12, -inf }
 0x389   :  { %v775_v18 = vpop.f32.mrb[19].mxu1  ;;  %806 = vmax.xlane.f32.xlu0 %v805_v16  ;;  %v781_v21 = vadd.f32 %v1595_v15, %v23_v17 }
 0x38a   :  { %v776_v19 = vadd.f32 %v775_v18, %v22_v13 }
 0x38b   :  { %v814_v31 = vsel %vm804_vm7, %v781_v21, -inf }
 0x38c   :  { %v1598_v22 = vpop.f32.mrb[20].mxu1  ;;  %v811_v23 = vsel %vm804_vm7, %v776_v19, -inf }
 0x38d   :  { %v785_v26 = vpop.f32.mrb[21].mxu1  ;;  %812 = vmax.xlane.f32.xlu1 %v811_v23  ;;  %809 = vmax.xlane.f32.xlu0 %v808_v24  ;;  %v791_v29 = vadd.f32 %v1598_v22, %v25_v25 }
 0x38e   :  { %v786_v27 = vadd.f32 %v785_v26, %v24_v20 }
 0x38f   :  { %v820_v37 = vsel %vm804_vm7, %v791_v29, -inf }
 0x390   :  { %v1601_v30 = vpop.f32.mrb[22].mxu1  ;;  %v817_v32 = vsel %vm804_vm7, %v786_v27, -inf }
 0x391   :  { %815 = vmax.xlane.f32.xlu1 %v814_v31  ;;  %818 = vmax.xlane.f32.xlu0 %v817_v32  ;;  %v795_v34 = vpop.f32.mrb[23].mxu1  ;;  %v801_v36 = vadd.f32 %v1601_v30, %v27_v33 }
 0x392   :  { %v796_v35 = vadd.f32 %v795_v34, %v26_v28 }
 0x393   :  { %v826_v39 = vsel %vm804_vm7, %v801_v36, -inf }
 0x394   :  { %v823_v38 = vsel %vm804_vm7, %v796_v35, -inf }
 0x395   :  { %821 = vmax.xlane.f32.xlu1 %v820_v37  ;;  %824 = vmax.xlane.f32.xlu0 %v823_v38 }
 0x399   :  { %827 = vmax.xlane.f32.xlu1 %v826_v39 }
 0x416   :  { %v807_v40 = vpop.xlane.xlu0 %806 }
 0x417   :  { %v829_v41 = vsub.f32 %v766_v12, %v807_v40 }
 0x419   :  { %v837_v42 = vmul.f32 1.442695, %v829_v41 }
 0x41a   :  { %v813_v43 = vpop.xlane.xlu1 %812  ;;  %v810_v44 = vpop.xlane.xlu0 %809 }
 0x41b   :  { %1750 = vpow2.f32 %v837_v42  ;;  %v831_v45 = vsub.f32 %v776_v19, %v813_v43  ;;  %v830_v46 = vsub.f32 %v771_v14, %v810_v44  ;;  %v28_v42 = vld [vmem:[%s2188_s1 + $0x40] sm:$0xff] }
 0x41d   :  { %v841_v47 = vmul.f32 1.442695, %v831_v45  ;;  %v839_v48 = vmul.f32 1.442695, %v830_v46 }
 0x41e   :  { %v816_v49 = vpop.xlane.xlu1 %815  ;;  %v819_v50 = vpop.xlane.xlu0 %818 }
 0x41f   :  { %1752 = vpow2.f32 %v841_v47  ;;  %v832_v51 = vsub.f32 %v781_v21, %v816_v49  ;;  %v833_v52 = vsub.f32 %v786_v27, %v819_v50 }
 0x420   :  { %1754 = vpow2.f32 %v839_v48 }
 0x421   :  { %v843_v53 = vmul.f32 1.442695, %v832_v51  ;;  %v845_v55 = vmul.f32 1.442695, %v833_v52  ;;  %v77_v52 = vld [vmem:[%s2188_s1 + $0x1c8] sm:$0xff] }
 0x422   :  { %v822_v56 = vpop.xlane.xlu1 %821  ;;  %v825_v57 = vpop.xlane.xlu0 %824 }
 0x423   :  { %1756 = vpow2.f32 %v843_v53  ;;  %v834_v58 = vsub.f32 %v791_v29, %v822_v56  ;;  %v835_v59 = vsub.f32 %v796_v35, %v825_v57  ;;  %v78_v53 = vld [vmem:[%s2188_s1 + $0x1d0] sm:$0xff] }
 0x424   :  { %1758 = vpow2.f32 %v845_v55 }
 0x425   :  { %v1751_v60 = vpop.eup %1750  ;;  %v847_v61 = vmul.f32 1.442695, %v834_v58  ;;  %v849_v62 = vmul.f32 1.442695, %v835_v59  ;;  %v1737_v58 = vpack.c.bf16 %v78_v53, %v77_v52  ;;  %v29_v59 = vld [vmem:[%s2188_s1 + $0x48] sm:$0xff] }
 0x426   :  { %v828_v63 = vpop.xlane.xlu1 %827  ;;  %v853_v54 = vsel %vm804_vm7, %v1751_v60, 0.0 }
 0x427   :  { %1760 = vpow2.f32 %v847_v61  ;;  %v836_v0 = vsub.f32 %v801_v36, %v828_v63  ;;  %854 = vadd.xlane.f32.xlu0 %v853_v54  ;;  %v80_v61 = vld [vmem:[%s2188_s1 + $0x1e0] sm:$0xff]  ;;  %v81_v63 = vld [vmem:[%s2188_s1 + $0x1e8] sm:$0xf] }
 0x428   :  { %1762 = vpow2.f32 %v849_v62  ;;  %v1401_v54 = vld [vmem:[%s2188_s1 + $0x200] ss:$0 sm:$0xff] }
 0x429   :  { %v1753_v2 = vpop.eup %1752  ;;  %v851_v3 = vmul.f32 1.442695, %v836_v0 }
 0x42a   :  { %v1755_v1 = vpop.eup %1754  ;;  %v859_v4 = vsel %vm804_vm7, %v1753_v2, 0.0 }
 0x42b   :  { %1764 = vpow2.f32 %v851_v3  ;;  %v856_v7 = vsel %vm804_vm7, %v1755_v1, 0.0  ;;  %860 = vadd.xlane.f32.xlu0 %v859_v4 }
 0x42c   :  { %857 = vadd.xlane.f32.xlu1 %v856_v7 }
 0x42d   :  { %v1757_v8 = vpop.eup %1756 }
 0x42e   :  { %v1759_v9 = vpop.eup %1758  ;;  %v862_v10 = vsel %vm804_vm7, %v1757_v8, 0.0 }
 0x42f   :  { %v865_v11 = vsel %vm804_vm7, %v1759_v9, 0.0 }
 0x430   :  { %863 = vadd.xlane.f32.xlu1 %v862_v10  ;;  %866 = vadd.xlane.f32.xlu0 %v865_v11 }
 0x431   :  { %v1761_v12 = vpop.eup %1760 }
 0x432   :  { %v1763_v13 = vpop.eup %1762  ;;  %v868_v14 = vsel %vm804_vm7, %v1761_v12, 0.0 }
 0x433   :  { %v871_v15 = vsel %vm804_vm7, %v1763_v13, 0.0 }
 0x434   :  { %869 = vadd.xlane.f32.xlu1 %v868_v14  ;;  %872 = vadd.xlane.f32.xlu0 %v871_v15 }
 0x435   :  { %v1765_v16 = vpop.eup %1764 }
 0x436   :  { %v874_v17 = vsel %vm804_vm7, %v1765_v16, 0.0 }
 0x438   :  { %875 = vadd.xlane.f32.xlu1 %v874_v17 }
 0x4b4   :  { %v855_v18 = vpop.xlane.xlu0 %854 }
 0x4b5   :  { %1766 = vrcp.f32 %v855_v18 }
 0x4b8   :  { %v861_v19 = vpop.xlane.xlu0 %860 }
 0x4b9   :  { %v858_v20 = vpop.xlane.xlu1 %857  ;;  %1768 = vrcp.f32 %v861_v19 }
 0x4ba   :  { %1770 = vrcp.f32 %v858_v20 }
 0x4bd   :  { %v864_v21 = vpop.xlane.xlu1 %863  ;;  %v867_v22 = vpop.xlane.xlu0 %866 }
 0x4be   :  { %1772 = vrcp.f32 %v864_v21 }
 0x4bf   :  { %v1767_v23 = vpop.eup %1766  ;;  %1774 = vrcp.f32 %v867_v22 }
 0x4c0   :  { %v885_v24 = vmul.f32 %v1767_v23, %v1751_v60  ;;  %v79_v60 = vld [vmem:[%s2188_s1 + $0x1d8] sm:$0xff] }
 0x4c1   :  { %v870_v25 = vpop.xlane.xlu1 %869  ;;  %v873_v26 = vpop.xlane.xlu0 %872  ;;  %v1741_v62 = vpack.c.bf16 %v80_v61, %v79_v60 }
 0x4c2   :  { %1776 = vrcp.f32 %v870_v25  ;;  %1618 = vmatprep.mubr.msk.f32.mxu0 %vm804_vm7, %v885_v24 }
 0x4c3   :  { %v1769_v27 = vpop.eup %1768  ;;  %1778 = vrcp.f32 %v873_v26 }
 0x4c4   :  { %v1771_v28 = vpop.eup %1770  ;;  %v887_v29 = vmul.f32 %v1769_v27, %v1753_v2 }
 0x4c5   :  { %v886_v30 = vmul.f32 %v1771_v28, %v1755_v1  ;;  %v876_v31 = vpop.xlane.xlu1 %875 }
 0x4c6   :  { %1780 = vrcp.f32 %v876_v31 }
 0x4c7   :  { %1619 = vmatmul.mubr.msk.f32.vlgmr.msra.gmra.mrb[18].mxu0 %vm804_vm7, %v886_v30 }
 0x4c8   :  { %v1773_v32 = vpop.eup %1772  ;;  %1621 = vmatprep.mubr.msk.f32.mxu0 %vm804_vm7, %v887_v29 }
 0x4c9   :  { %v1775_v33 = vpop.eup %1774  ;;  %v888_v34 = vmul.f32 %v1773_v32, %v1757_v8  ;;  %v83_v8 = vld [vmem:[%s2188_s1 + $0x1f8] sm:$0xff] }
 0x4ca   :  { %v889_v35 = vmul.f32 %v1775_v33, %v1759_v9  ;;  %v82_v9 = vld [vmem:[%s2188_s1 + $0x1f0] sm:$0xff] }
 0x4cb   :  { %1622 = vmatmul.mubr.msk.f32.gmra.mrb[20].mxu0 %vm804_vm7, %v888_v34 }
 0x4cc   :  { %v1777_v36 = vpop.eup %1776  ;;  %1624 = vmatprep.mubr.msk.f32.mxu0 %vm804_vm7, %v889_v35 }
 0x4cd   :  { %v1779_v37 = vpop.eup %1778  ;;  %v890_v38 = vmul.f32 %v1777_v36, %v1761_v12 }
 0x4ce   :  { %v891_v39 = vmul.f32 %v1779_v37, %v1763_v13 }
 0x4cf   :  { %1625 = vmatmul.mubr.msk.f32.gmra.mrb[22].mxu0 %vm804_vm7, %v890_v38 }
 0x4d0   :  { %v1781_v40 = vpop.eup %1780  ;;  %1627 = vmatprep.mubr.msk.f32.mxu0 %vm804_vm7, %v891_v39 }
 0x4d1   :  { %v892_v41 = vmul.f32 %v1781_v40, %v1765_v16  ;;  %v1409_v40 = vld [vmem:[%s2188_s1 + $0x201] ss:$0 sm:$0xff] }
 0x4d3   :  { %1628 = vmatmul.mubr.msk.f32.gmra.mrb[24].mxu0 %vm804_vm7, %v892_v41 }
 0x4d4   :  { %1646 = vmatprep.mubr.msk.f32.mxu0 %vm804_vm7, %v28_v42 }
 0x59a   :  { %v1620_v43 = vpop.f32.mrb[18].mxu0 }
 0x59b   :  { %v983_v44 = vpop.f32.mrb[19].mxu0 }
 0x59c   :  { %v1721_v45 = vpack.c.bf16 %v1620_v43, %v983_v44  ;;  %v1410_v44 = vld [vmem:[%s2188_s1 + $0x202] ss:$0 sm:$0xff] }
 0x59e   :  { %v1623_v46 = vpop.f32.mrb[20].mxu0  ;;  %1722 = vmatprep.subr.bf16.mxu0 %v1721_v45 }
 0x59f   :  { %v993_v47 = vpop.f32.mrb[21].mxu0  ;;  %1724 = vmatpush3.bf16.msra.mxu0 %v1721_v45 }
 0x5a0   :  { %v1725_v48 = vpack.c.bf16 %v1623_v46, %v993_v47 }
 0x5a2   :  { %v1626_v49 = vpop.f32.mrb[22].mxu0  ;;  %1726 = vmatprep.subr.bf16.mxu0 %v1725_v48 }
 0x5a3   :  { %v1003_v50 = vpop.f32.mrb[23].mxu0  ;;  %1728 = vmatpush3.bf16.msra.mxu0 %v1725_v48 }
 0x5a4   :  { %v1729_v51 = vpack.c.bf16 %v1626_v49, %v1003_v50 }
 0x5a6   :  { %v1629_v55 = vpop.f32.mrb[24].mxu0  ;;  %1730 = vmatprep.subr.bf16.mxu0 %v1729_v51 }
 0x5a7   :  { %v1013_v56 = vpop.f32.mrb[25].mxu0  ;;  %1732 = vmatpush3.bf16.msra.mxu0 %v1729_v51 }
 0x5a8   :  { %v1733_v57 = vpack.c.bf16 %v1629_v55, %v1013_v56 }
 0x5aa   :  { %1734 = vmatprep.subr.bf16.mxu0 %v1733_v57 }
 0x5ab   :  { %1736 = vmatpush3.bf16.msra.mxu0 %v1733_v57 }
 0x5ac   :  { %1738 = vmatprep.subr.bf16.mxu0 %v1737_v58 }
 0x5ae   :  { %1647 = vmatmul.mubr.msk.f32.vlgmr.msra.gmra.mrb[26].mxu0 %vm804_vm7, %v29_v59 }
 0x5af   :  { %1740 = vmatpush3.bf16.msra.mxu0 %v1737_v58 }
 0x5b0   :  { %1742 = vmatprep.subr.bf16.mxu0 %v1741_v62 }
 0x5b3   :  { %1744 = vmatpush3.bf16.msra.mxu0 %v1741_v62 }
 0x5b4   :  { %1660 = vmatprep.subr.msk.mxu0 %vm94_vm0, %v81_v63 }
 0x681   :  { %v1648_v0 = vpop.f32.mrb[26].mxu0 }
 0x682   :  { %v1104_v2 = vadd.f32 %v1648_v0, %v1401_v54  ;;  %v1098_v3 = vpop.f32.mrb[27].mxu0 }
 0x683   :  { %v1099_v1 = vadd.f32 %v1401_v54, %v1098_v3 }
 0x684   :  { %v1108_v7 = vmax.f32 %v1104_v2, 0.0 }
 0x685   :  { %v1107_v4 = vmax.f32 %v1099_v1, 0.0 }
 0x687   :  { %1657 = vmatprep.mubr.msk.f32.mxu0 %vm1109_vm8, %v1107_v4 }
 0x688   :  { %1658 = vmatmul.mubr.msk.f32.vlgmr.msra.gmra.mrb[28].mxu0 %vm1109_vm8, %v1108_v7 }
 0x689   :  { %1661 = vmatpush3.msk.msra.mxu0 %vm94_vm0, %v81_v63  ;;  %1662 = vmatprep.mubr.msk.f32.mxu0 %vm87_vm1, %v1849_v5 }
 0x690   :  { %1663 = vmatmul.mubr.msk.f32.vlgmr.msra.gmra.mrb[28].mxu0 %vm87_vm1, %v1853_v6 }
 0x763   :  { %v1664_v10 = vpop.f32.mrb[28].mxu0 }
 0x764   :  { %v1270_v11 = vadd.f32 %v1664_v10, %v83_v8  ;;  %v1260_v12 = vpop.f32.mrb[29].mxu0 }
 0x765   :  { %v1269_v13 = vadd.f32 %v1260_v12, %v82_v9 }
 0x766   :  { %v1274_v14 = vsel %vm1109_vm8, %v1270_v11, 0.0 }
 0x767   :  { %1275 = vadd.xlane.f32.xlu1 %v1274_v14  ;;  %v1271_v5 = vsel %vm1109_vm8, %v1269_v13, 0.0 }
 0x768   :  { %1272 = vadd.xlane.f32.xlu0 %v1271_v5 }
 0x7f4   :  { %v1276_v15 = vpop.xlane.xlu1 %1275 }
 0x7f5   :  { %v1279_v6 = vmul.f32 0.03125, %v1276_v15  ;;  %v1273_v16 = vpop.xlane.xlu0 %1272 }
 0x7f6   :  { %v1278_v17 = vmul.f32 0.03125, %v1273_v16 }
 0x7f7   :  { %v1281_v18 = vsub.f32 %v1270_v11, %v1279_v6 }
 0x7f8   :  { %v1280_v19 = vsub.f32 %v1269_v13, %v1278_v17 }
 0x7f9   :  { %v1283_v20 = vmul.f32 %v1281_v18, %v1281_v18  ;;  %v1315_v41 = vmul.f32 %v1409_v40, %v1281_v18 }
 0x7fa   :  { %v1282_v21 = vmul.f32 %v1280_v19, %v1280_v19  ;;  %v1314_v43 = vmul.f32 %v1409_v40, %v1280_v19 }
 0x7fb   :  { %v1287_v22 = vsel %vm1109_vm8, %v1283_v20, 0.0 }
 0x7fc   :  { %1288 = vadd.xlane.f32.xlu1 %v1287_v22  ;;  %v1284_v23 = vsel %vm1109_vm8, %v1282_v21, 0.0 }
 0x7fd   :  { %1285 = vadd.xlane.f32.xlu0 %v1284_v23 }
 0x889   :  { %v1289_v24 = vpop.xlane.xlu1 %1288 }
 0x88a   :  { %v1291_v25 = vmul.f32 0.032258064, %v1289_v24  ;;  %v1286_v26 = vpop.xlane.xlu0 %1285 }
 0x88b   :  { %v1290_v27 = vmul.f32 0.032258064, %v1286_v26 }
 0x88c   :  { %1782 = vrsqrt.f32 %v1291_v25  ;;  %vm1301_vm9 = vcmp.eq.f32.partialorder %v1291_v25, inf  ;;  %v1304_v31 = vand.u32 2147483648, %v1291_v25  ;;  %vm1303_vm10 = vcmp.eq.f32.partialorder %v1291_v25, 0.0 }
 0x88d   :  { %1784 = vrsqrt.f32 %v1290_v27  ;;  %vm1294_vm11 = vcmp.eq.f32.partialorder %v1290_v27, inf  ;;  %v1297_v34 = vand.u32 2147483648, %v1290_v27  ;;  %vm1296_vm12 = vcmp.eq.f32.partialorder %v1290_v27, 0.0 }
 0x896   :  { %v1783_v28 = vpop.eup %1782 }
 0x897   :  { %v1785_v29 = vpop.eup %1784  ;;  %v1300_v30 = vmul.f32 %v1783_v28, %v1291_v25 }
 0x898   :  { %v1293_v32 = vmul.f32 %v1785_v29, %v1290_v27 }
 0x899   :  { %v1302_v33 = vsel %vm1301_vm9, %v1291_v25, %v1300_v30 }
 0x89a   :  { %v1305_v35 = vsel %vm1303_vm10, %v1304_v31, %v1302_v33  ;;  %v1295_v36 = vsel %vm1294_vm11, %v1290_v27, %v1293_v32 }
 0x89b   :  { %v1307_v37 = vadd.f32 1e-06, %v1305_v35  ;;  %v1298_v38 = vsel %vm1296_vm12, %v1297_v34, %v1295_v36 }
 0x89c   :  { %v1306_v39 = vadd.f32 1e-06, %v1298_v38 }
 0x89d   :  { %1786 = vrcp.f32 %v1307_v37 }
 0x89e   :  { %1788 = vrcp.f32 %v1306_v39 }
 0x8a7   :  { %v1787_v42 = vpop.eup %1786 }
 0x8a8   :  { %v1789_v45 = vpop.eup %1788  ;;  %v1317_v46 = vmul.f32 %v1787_v42, %v1315_v41 }
 0x8a9   :  { %v1316_v47 = vmul.f32 %v1789_v45, %v1314_v43 }
 0x8aa   :  { %v1323_v48 = vadd.f32 %v1410_v44, %v1317_v46 }
 0x8ab   :  { %v1322_v49 = vadd.f32 %v1410_v44, %v1316_v47 }
 0x8ac   :  { %1325 = vst.msk [vmem:[#allocation2 + $0x8] sm:$0xff] %vm1109_vm8, %v1323_v48 }
 0x8ad   :  { %1324 = vst.msk [vmem:[#allocation2] sm:$0xff] %vm1109_vm8, %v1322_v49 }
 0x8ae   :  { %1801 = shalt.err (!%p1798_p4)
}
 0x8af   :  { %s1802_s10 = scalar_lea.hbm %s2189_s2, 256 }
 0x8b0   :  { %p1803_p5 = scmp.ne.s32.totalorder %s2189_s2, %s1802_s10  ;;  %p1806_p6 = scmp.lt.u32.totalorder %s1802_s10, %s2189_s2 }
 0x8b2   :  { %p1808_p7 = pnand %p1806_p6, %p1803_p5 }
 0x8b4   :  { %1811 = shalt.err (!%p1808_p7)
}
 0x8b5   :  { %s1815_s15 = smov 128   ;;  %s1816_s16 = smov 8  }
 0x8b6   :  { %1337 = dma.vmem_to_hbm [thread:$0]  %s1332_s7, 256, %s2189_s2, [#allocation3], %s1815_s15, %s1815_s15, %s1816_s16  }
 0x8b7   :  { %1812 = dma.done.wait [#allocation3], 256  }
 0x8b8   :  { %1813 = vsyncadd [#allocation3], 4294967040 }
 0x8b9   :  { %1341 = vsyncpa [#allocation3], 1 }

</bundles_post_ra>
